<compile_context>
chip_gen: v5e
topology: v5e:2x2
jax: 0.10.0
libtpu: 0.0.40
codegen_flags: <defaults>
</compile_context>

<pallas_src>
import functools

import jax
import jax.numpy as jnp
from jax.experimental import pallas as pl
from jax.experimental.pallas import tpu as pltpu

EPS = 1e-5
LANE = 128
SUBLANE = 8
# Above this (rough) f32 resident footprint the fused whole-batch kernel is
# abandoned for the batch-tiled two-pass-BN path (v7x: 64 MiB physical VMEM).
_FUSED_FOOTPRINT_LIMIT = 24 << 20


# --------------------------------------------------------------------------- #
# helpers
# --------------------------------------------------------------------------- #
def _round_up(n, m):
    return ((n + m - 1) // m) * m


def _nbytes(shape, dtype):
    n = 1
    for d in shape:
        n *= int(d)
    return n * jnp.dtype(dtype).itemsize


def _vmem_limit(resident_bytes):
    # 2x (double buffering) + 1 MiB slack; clamp to a budget every generation
    # (incl. v7x's 64 MiB physical VMEM) can grant.
    return int(min(max(2 * resident_bytes + (1 << 20), 8 << 20), 60 << 20))


def _pad2d(a, rows, cols, row_fill=0.0, col_fill=0.0):
    """Constant-pad a 2-D array to (rows, cols)."""
    r, c = a.shape
    if c < cols:
        a = jnp.concatenate([a, jnp.full((r, cols - c), col_fill, a.dtype)], axis=1)
    if r < rows:
        a = jnp.concatenate([a, jnp.full((rows - r, a.shape[1]), row_fill, a.dtype)],
                            axis=0)
    return a


def _bn_scale_shift(ssum, ssq, gamma, beta, b_true):
    """Fold BN(train) into one scale/shift from partial sums (tiny 1xH work)."""
    m = ssum / b_true
    v = jnp.maximum(ssq / b_true - m * m, 0.0)       # clamp: no NaN from cancellation
    s = gamma * jax.lax.rsqrt(v + EPS)
    t = beta - m * s
    return s, t


# --------------------------------------------------------------------------- #
# kernels
# --------------------------------------------------------------------------- #
def _fused_kernel(x_ref, w1_ref, g1_ref, be1_ref, w2_ref, g2_ref, be2_ref,
                  w3_ref, b3_ref, o_ref):
    """Whole batch resident; BN uses full-batch statistics (training mode)."""
    cdt = w1_ref.dtype                       # MXU operand dtype (bf16 or f32)
    x = x_ref[...]
    inv_b = 1.0 / x.shape[0]                 # true batch size (no batch padding here)

    # fc1 (bias cancelled by training-mode BN) + fused BN scale/shift + relu
    h1 = jnp.dot(x.astype(cdt), w1_ref[...], preferred_element_type=jnp.float32)
    m1 = jnp.sum(h1, axis=0, keepdims=True) * inv_b
    v1 = jnp.maximum(jnp.sum(h1 * h1, axis=0, keepdims=True) * inv_b - m1 * m1, 0.0)
    s1 = g1_ref[...] * jax.lax.rsqrt(v1 + EPS)       # EUP slot
    t1 = be1_ref[...] - m1 * s1
    a1 = jnp.maximum(h1 * s1 + t1, 0.0)

    # fc2 (bias cancelled) + fused BN + relu
    h2 = jnp.dot(a1.astype(cdt), w2_ref[...], preferred_element_type=jnp.float32)
    m2 = jnp.sum(h2, axis=0, keepdims=True) * inv_b
    v2 = jnp.maximum(jnp.sum(h2 * h2, axis=0, keepdims=True) * inv_b - m2 * m2, 0.0)
    s2 = g2_ref[...] * jax.lax.rsqrt(v2 + EPS)
    t2 = be2_ref[...] - m2 * s2
    a2 = jnp.maximum(h2 * s2 + t2, 0.0)

    # fc3 (bias kept, added in f32)
    out = jnp.dot(a2.astype(cdt), w3_ref[...], preferred_element_type=jnp.float32)
    o_ref[...] = (out + b3_ref[...]).astype(o_ref.dtype)


def _fc_stats_kernel(x_ref, w_ref, h_ref, sum_ref, sq_ref):
    """Tiled pass 1: h = x @ w (bias cancelled by BN) + partial batch stats."""
    i = pl.program_id(0)
    h = jnp.dot(x_ref[...].astype(w_ref.dtype), w_ref[...],
                preferred_element_type=jnp.float32)
    h_ref[...] = h

    @pl.when(i == 0)
    def _():
        sum_ref[...] = jnp.zeros_like(sum_ref)
        sq_ref[...] = jnp.zeros_like(sq_ref)

    # Padded batch rows of x are exactly zero (and fc1 has no bias here), so
    # they contribute 0 to both partial sums.
    sum_ref[...] += jnp.sum(h, axis=0, keepdims=True)
    sq_ref[...] += jnp.sum(h * h, axis=0, keepdims=True)


def _bn_fc_stats_kernel(h_ref, s_ref, t_ref, w_ref, o_ref, sum_ref, sq_ref, *,
                        bt, b_true):
    """Tiled pass 2: BN scale/shift + relu + fc2 + partial batch stats."""
    i = pl.program_id(0)
    a = jnp.maximum(h_ref[...] * s_ref[...] + t_ref[...], 0.0)
    h2 = jnp.dot(a.astype(w_ref.dtype), w_ref[...],
                 preferred_element_type=jnp.float32)
    o_ref[...] = h2

    @pl.when(i == 0)
    def _():
        sum_ref[...] = jnp.zeros_like(sum_ref)
        sq_ref[...] = jnp.zeros_like(sq_ref)

    # BN's shift makes padded (zero) batch rows non-zero, so mask them out of
    # the next layer's statistics; the wrapper divides by the true batch size.
    rows = i * bt + jax.lax.broadcasted_iota(jnp.int32, (bt, 1), 0)
    hm = jnp.where(rows < b_true, h2, 0.0)
    sum_ref[...] += jnp.sum(hm, axis=0, keepdims=True)
    sq_ref[...] += jnp.sum(hm * hm, axis=0, keepdims=True)


def _bn_fc_bias_kernel(h_ref, s_ref, t_ref, w_ref, b_ref, o_ref):
    """Tiled pass 3: BN scale/shift + relu + fc3 + bias."""
    a = jnp.maximum(h_ref[...] * s_ref[...] + t_ref[...], 0.0)
    out = jnp.dot(a.astype(w_ref.dtype), w_ref[...],
                  preferred_element_type=jnp.float32)
    o_ref[...] = (out + b_ref[...]).astype(o_ref.dtype)


# --------------------------------------------------------------------------- #
# parameter preparation (done ONCE, hoisted out of the forward)
# --------------------------------------------------------------------------- #
def prepare_params(params, use_bf16=True):
    """Pad + cast all weights once.

    b1/b2 are intentionally dropped: a bias feeding a training-mode BatchNorm
    cancels exactly ((h+b) - mean(h+b) == h - mean(h)).  Padded weight
    rows/cols are zero, padded gamma=1 / beta=0 / b3=0, so padded feature
    columns remain exactly zero through every layer and are sliced off after
    the call.
    """
    in_sz, h1_sz = params["w1"].shape
    h2_sz = params["w2"].shape[1]
    out_sz = params["w3"].shape[1]
    in_p, h1_p, h2_p, out_p = (_round_up(d, LANE) for d in (in_sz, h1_sz, h2_sz, out_sz))
    wdt = jnp.bfloat16 if use_bf16 else jnp.float32      # MXU operand dtype

    pp = dict(
        w1=_pad2d(params["w1"], in_p, h1_p).astype(wdt),
        g1=_pad2d(params["g1"], 1, h1_p, col_fill=1.0),
        be1=_pad2d(params["be1"], 1, h1_p),
        w2=_pad2d(params["w2"], h1_p, h2_p).astype(wdt),
        g2=_pad2d(params["g2"], 1, h2_p, col_fill=1.0),
        be2=_pad2d(params["be2"], 1, h2_p),
        w3=_pad2d(params["w3"], h2_p, out_p).astype(wdt),
        b3=_pad2d(params["b3"], 1, out_p),
    )
    dims = dict(in_sz=in_sz, h1_sz=h1_sz, h2_sz=h2_sz, out_sz=out_sz,
                in_p=in_p, h1_p=h1_p, h2_p=h2_p, out_p=out_p)
    return pp, dims


# --------------------------------------------------------------------------- #
# forward paths
# --------------------------------------------------------------------------- #
def _fused_forward(x, pp, dims, B, fused_bytes):
    in_p, h1_p, h2_p, out_p = dims["in_p"], dims["h1_p"], dims["h2_p"], dims["out_p"]
    out_sz = dims["out_sz"]
    args = (x, pp["w1"], pp["g1"], pp["be1"], pp["w2"], pp["g2"], pp["be2"],
            pp["w3"], pp["b3"])

    full = lambda a: pl.BlockSpec(a.shape, lambda: (0,) * a.ndim,
                                  memory_space=pltpu.VMEM)

    flops = 2 * B * (in_p * h1_p + h1_p * h2_p + h2_p * out_p)
    bytes_accessed = (sum(_nbytes(a.shape, a.dtype) for a in args)
                      + _nbytes((B, out_p), jnp.float32))
    cost = pl.CostEstimate(flops=flops, transcendentals=h1_p + h2_p,
                           bytes_accessed=bytes_accessed)

    out = pl.pallas_call(
        _fused_kernel,
        out_shape=jax.ShapeDtypeStruct((B, out_p), jnp.float32),
        in_specs=[full(a) for a in args],
        out_specs=pl.BlockSpec((B, out_p), lambda: (0, 0),
                               memory_space=pltpu.VMEM),
        compiler_params=pltpu.CompilerParams(
            vmem_limit_bytes=_vmem_limit(fused_bytes)),
        cost_estimate=cost,
    )(*args)
    return out[:, :out_sz]


def _tiled_forward(x, pp, dims, B, batch_tile):
    """Batch-tiled two-pass-BN path: three pipelined pallas_calls."""
    in_p, h1_p, h2_p, out_p = dims["in_p"], dims["h1_p"], dims["h2_p"], dims["out_p"]
    out_sz = dims["out_sz"]
    cdt = pp["w1"].dtype
    f32 = jnp.float32

    bt = max(SUBLANE, _round_up(min(batch_tile, B), SUBLANE))
    b_pad = _round_up(B, bt)
    nbt = b_pad // bt
    if b_pad != B:
        x = jnp.pad(x, ((0, b_pad - B), (0, 0)))      # padded rows are exact zeros

    # ---- pass 1: fc1 tiles + BN1 partial sums ----
    vmem_a = _vmem_limit(_nbytes(pp["w1"].shape, cdt)
                         + bt * (in_p + h1_p) * 4 + 2 * h1_p * 4)
    cost_a = pl.CostEstimate(
        flops=2 * b_pad * in_p * h1_p, transcendentals=0,
        bytes_accessed=(_nbytes((b_pad, in_p), x.dtype)
                        + _nbytes(pp["w1"].shape, cdt)
                        + _nbytes((b_pad, h1_p), f32)))
    h1, sum1, sq1 = pl.pallas_call(
        _fc_stats_kernel,
        grid=(nbt,),
        in_specs=[pl.BlockSpec((bt, in_p), lambda i: (i, 0)),
                  pl.BlockSpec((in_p, h1_p), lambda i: (0, 0))],
        out_specs=[pl.BlockSpec((bt, h1_p), lambda i: (i, 0)),
                   pl.BlockSpec((1, h1_p), lambda i: (0, 0)),
                   pl.BlockSpec((1, h1_p), lambda i: (0, 0))],
        out_shape=[jax.ShapeDtypeStruct((b_pad, h1_p), f32),
                   jax.ShapeDtypeStruct((1, h1_p), f32),
                   jax.ShapeDtypeStruct((1, h1_p), f32)],
        compiler_params=pltpu.CompilerParams(
            dimension_semantics=("arbitrary",),     # resident stat accumulators
            vmem_limit_bytes=vmem_a),
        cost_estimate=cost_a,
    )(x, pp["w1"])
    s1, t1 = _bn_scale_shift(sum1, sq1, pp["g1"], pp["be1"], B)

    # ---- pass 2: BN1+relu+fc2 tiles + BN2 partial sums ----
    vmem_b = _vmem_limit(_nbytes(pp["w2"].shape, cdt)
                         + bt * (h1_p + h2_p) * 4 + (2 * h1_p + 2 * h2_p) * 4)
    cost_b = pl.CostEstimate(
        flops=2 * b_pad * h1_p * h2_p, transcendentals=0,
        bytes_accessed=(_nbytes((b_pad, h1_p), f32)
                        + _nbytes(pp["w2"].shape, cdt)
                        + _nbytes((b_pad, h2_p), f32)))
    h2, sum2, sq2 = pl.pallas_call(
        functools.partial(_bn_fc_stats_kernel, bt=bt, b_true=B),
        grid=(nbt,),
        in_specs=[pl.BlockSpec((bt, h1_p), lambda i: (i, 0)),
                  pl.BlockSpec((1, h1_p), lambda i: (0, 0)),
                  pl.BlockSpec((1, h1_p), lambda i: (0, 0)),
                  pl.BlockSpec((h1_p, h2_p), lambda i: (0, 0))],
        out_specs=[pl.BlockSpec((bt, h2_p), lambda i: (i, 0)),
                   pl.BlockSpec((1, h2_p), lambda i: (0, 0)),
                   pl.BlockSpec((1, h2_p), lambda i: (0, 0))],
        out_shape=[jax.ShapeDtypeStruct((b_pad, h2_p), f32),
                   jax.ShapeDtypeStruct((1, h2_p), f32),
                   jax.ShapeDtypeStruct((1, h2_p), f32)],
        compiler_params=pltpu.CompilerParams(
            dimension_semantics=("arbitrary",),
            vmem_limit_bytes=vmem_b),
        cost_estimate=cost_b,
    )(h1, s1, t1, pp["w2"])
    s2, t2 = _bn_scale_shift(sum2, sq2, pp["g2"], pp["be2"], B)

    # ---- pass 3: BN2+relu+fc3+bias (no accumulator -> parallel batch axis) ----
    vmem_c = _vmem_limit(_nbytes(pp["w3"].shape, cdt)
                         + bt * (h2_p + out_p) * 4 + (2 * h2_p + out_p) * 4)
    cost_c = pl.CostEstimate(
        flops=2 * b_pad * h2_p * out_p, transcendentals=0,
        bytes_accessed=(_nbytes((b_pad, h2_p), f32)
                        + _nbytes(pp["w3"].shape, cdt)
                        + _nbytes((b_pad, out_p), f32)))
    out = pl.pallas_call(
        _bn_fc_bias_kernel,
        grid=(nbt,),
        in_specs=[pl.BlockSpec((bt, h2_p), lambda i: (i, 0)),
                  pl.BlockSpec((1, h2_p), lambda i: (0, 0)),
                  pl.BlockSpec((1, h2_p), lambda i: (0, 0)),
                  pl.BlockSpec((h2_p, out_p), lambda i: (0, 0)),
                  pl.BlockSpec((1, out_p), lambda i: (0, 0))],
        out_specs=pl.BlockSpec((bt, out_p), lambda i: (i, 0)),
        out_shape=jax.ShapeDtypeStruct((b_pad, out_p), f32),
        compiler_params=pltpu.CompilerParams(
            dimension_semantics=("parallel",),
            vmem_limit_bytes=vmem_c),
        cost_estimate=cost_c,
    )(h2, s2, t2, pp["w3"], pp["b3"])

    return out[:B, :out_sz]


def generative_model_forward(x, pp, dims, *, batch_tile=256, force_tiled=False):
    """Forward pass. `pp`/`dims` come from prepare_params (padding hoisted)."""
    B, in_sz = x.shape
    assert in_sz == dims["in_sz"], "input feature size mismatch"
    in_p = dims["in_p"]
    if in_sz != in_p:
        x = jnp.pad(x, ((0, 0), (0, in_p - in_sz)))   # lane-dense, zero padded

    # rough fused resident footprint: weights + x + a few live f32 activations
    w_bytes = sum(_nbytes(pp[k].shape, pp[k].dtype)
                  for k in ("w1", "g1", "be1", "w2", "g2", "be2", "w3", "b3"))
    fused_bytes = (w_bytes + _nbytes((B, in_p), x.dtype)
                   + 4 * B * (dims["h1_p"] + dims["h2_p"]) * 4
                   + _nbytes((B, dims["out_p"]), jnp.float32))

    if force_tiled or fused_bytes > _FUSED_FOOTPRINT_LIMIT:
        return _tiled_forward(x, pp, dims, B, batch_tile)
    return _fused_forward(x, pp, dims, B, fused_bytes)


# --------------------------------------------------------------------------- #
# init + pure-JAX reference (training-mode BN, biases kept)
# --------------------------------------------------------------------------- #
def init_params(key, input_size, h1, h2, output_size):
    ks = jax.random.split(key, 6)

    def lin(kw, kb, fan_in, fan_out):
        bound = 1.0 / jnp.sqrt(fan_in)
        w = jax.random.uniform(kw, (fan_in, fan_out), jnp.float32, -bound, bound)
        b = jax.random.uniform(kb, (1, fan_out), jnp.float32, -bound, bound)
        return w, b

    w1, b1 = lin(ks[0], ks[1], input_size, h1)
    w2, b2 = lin(ks[2], ks[3], h1, h2)
    w3, b3 = lin(ks[4], ks[5], h2, output_size)
    return dict(
        w1=w1, b1=b1, g1=jnp.ones((1, h1), jnp.float32), be1=jnp.zeros((1, h1), jnp.float32),
        w2=w2, b2=b2, g2=jnp.ones((1, h2), jnp.float32), be2=jnp.zeros((1, h2), jnp.float32),
        w3=w3, b3=b3,
    )


def reference_forward(x, p):
    h1 = x @ p["w1"] + p["b1"]
    m1 = h1.mean(0, keepdims=True)
    v1 = ((h1 - m1) ** 2).mean(0, keepdims=True)
    h1 = jnp.maximum((h1 - m1) / jnp.sqrt(v1 + EPS) * p["g1"] + p["be1"], 0.0)
    h2 = h1 @ p["w2"] + p["b2"]
    m2 = h2.mean(0, keepdims=True)
    v2 = ((h2 - m2) ** 2).mean(0, keepdims=True)
    h2 = jnp.maximum((h2 - m2) / jnp.sqrt(v2 + EPS) * p["g2"] + p["be2"], 0.0)
    return h2 @ p["w3"] + p["b3"]


# --------------------------------------------------------------------------- #
if __name__ == "__main__":
    key = jax.random.PRNGKey(0)
    k_x, k_p = jax.random.split(key)

    batch, input_size, hidden_size_1, hidden_size_2, output_size = 16, 16, 32, 32, 16

    x = jax.random.normal(k_x, (batch, input_size), jnp.float32)
    params = init_params(k_p, input_size, hidden_size_1, hidden_size_2, output_size)
    ref = reference_forward(x, params)

    # ---- f32 MXU operands: exact checks (fused + batch-tiled + ragged batch) ----
    pp32, dims32 = prepare_params(params, use_bf16=False)

    out_fused32 = jax.block_until_ready(generative_model_forward(x, pp32, dims32))
    assert out_fused32.shape == (batch, output_size)
    assert jnp.allclose(out_fused32, ref, atol=1e-4, rtol=1e-4), "fused f32 mismatch"

    out_tiled32 = jax.block_until_ready(
        generative_model_forward(x, pp32, dims32, batch_tile=8, force_tiled=True))
    assert jnp.allclose(out_tiled32, ref, atol=1e-4, rtol=1e-4), "tiled f32 mismatch"

    # ragged batch (not a multiple of the batch tile) exercises the stat masking
    x_rag = x[:12]
    ref_rag = reference_forward(x_rag, params)
    out_rag = jax.block_until_ready(
        generative_model_forward(x_rag, pp32, dims32, batch_tile=8, force_tiled=True))
    assert jnp.allclose(out_rag, ref_rag, atol=1e-4, rtol=1e-4), "ragged tiled mismatch"

    # ---- bf16 MXU operands (default): looser tolerance vs f32 reference ----
    ppbf, dimsbf = prepare_params(params, use_bf16=True)

    out_fused_bf = jax.block_until_ready(generative_model_forward(x, ppbf, dimsbf))
    assert jnp.allclose(out_fused_bf, ref, atol=5e-2, rtol=5e-2), "fused bf16 mismatch"

    out_tiled_bf = jax.block_until_ready(
        generative_model_forward(x, ppbf, dimsbf, batch_tile=8, force_tiled=True))
    assert jnp.allclose(out_tiled_bf, ref, atol=5e-2, rtol=5e-2), "tiled bf16 mismatch"

    print("KERNEL_OK")
</pallas_src>

<mosaic_0001>
module attributes {stable_mosaic.version = 11 : i64} {
  func.func @_fused_kernel(%arg0: memref<16x128xf32, #tpu.memory_space<vmem>>, %arg1: memref<128x128xf32, #tpu.memory_space<vmem>>, %arg2: memref<1x128xf32, #tpu.memory_space<vmem>>, %arg3: memref<1x128xf32, #tpu.memory_space<vmem>>, %arg4: memref<128x128xf32, #tpu.memory_space<vmem>>, %arg5: memref<1x128xf32, #tpu.memory_space<vmem>>, %arg6: memref<1x128xf32, #tpu.memory_space<vmem>>, %arg7: memref<128x128xf32, #tpu.memory_space<vmem>>, %arg8: memref<1x128xf32, #tpu.memory_space<vmem>>, %arg9: memref<16x128xf32, #tpu.memory_space<vmem>>) attributes {dimension_semantics = [], scalar_prefetch = 0 : i64, scratch_operands = 0 : i64, tpu.core_type = #tpu.core_type<tc>} {
    %c0 = arith.constant 0 : index
    %c0_0 = arith.constant 0 : index
    %0 = vector.load %arg0[%c0, %c0_0] : memref<16x128xf32, #tpu.memory_space<vmem>>, vector<16x128xf32>
    %c0_1 = arith.constant 0 : index
    %c0_2 = arith.constant 0 : index
    %1 = vector.load %arg1[%c0_1, %c0_2] : memref<128x128xf32, #tpu.memory_space<vmem>>, vector<128x128xf32>
    %cst = arith.constant dense<0.000000e+00> : vector<16x128xf32>
    %2 = tpu.matmul %0, %1, %cst {dimension_numbers = #tpu.dot_dimension_numbers<[1], [0], [0], [1], [0, 0, 1, 1], [], []>} : vector<16x128xf32>, vector<128x128xf32>, vector<16x128xf32> -> vector<16x128xf32>
    %cst_3 = arith.constant dense<0.000000e+00> : vector<128xf32>
    %3 = vector.multi_reduction <add>, %2, %cst_3 [0] : vector<16x128xf32> to vector<128xf32>
    %4 = vector.shape_cast %3 : vector<128xf32> to vector<1x128xf32>
    %cst_4 = arith.constant 6.250000e-02 : f32
    %5 = vector.broadcast %cst_4 : f32 to vector<1x128xf32>
    %6 = arith.mulf %4, %5 : vector<1x128xf32>
    %7 = arith.mulf %2, %2 : vector<16x128xf32>
    %cst_5 = arith.constant dense<0.000000e+00> : vector<128xf32>
    %8 = vector.multi_reduction <add>, %7, %cst_5 [0] : vector<16x128xf32> to vector<128xf32>
    %9 = vector.shape_cast %8 : vector<128xf32> to vector<1x128xf32>
    %cst_6 = arith.constant 6.250000e-02 : f32
    %10 = vector.broadcast %cst_6 : f32 to vector<1x128xf32>
    %11 = arith.mulf %9, %10 : vector<1x128xf32>
    %12 = arith.mulf %6, %6 : vector<1x128xf32>
    %13 = arith.subf %11, %12 : vector<1x128xf32>
    %cst_7 = arith.constant 0.000000e+00 : f32
    %14 = vector.broadcast %cst_7 : f32 to vector<1x128xf32>
    %15 = arith.maximumf %13, %14 : vector<1x128xf32>
    %c0_8 = arith.constant 0 : index
    %c0_9 = arith.constant 0 : index
    %16 = vector.load %arg2[%c0_8, %c0_9] : memref<1x128xf32, #tpu.memory_space<vmem>>, vector<1x128xf32>
    %cst_10 = arith.constant 9.99999974E-6 : f32
    %17 = vector.broadcast %cst_10 : f32 to vector<1x128xf32>
    %18 = arith.addf %15, %17 : vector<1x128xf32>
    %19 = math.rsqrt %18 : vector<1x128xf32>
    %20 = arith.mulf %16, %19 : vector<1x128xf32>
    %c0_11 = arith.constant 0 : index
    %c0_12 = arith.constant 0 : index
    %21 = vector.load %arg3[%c0_11, %c0_12] : memref<1x128xf32, #tpu.memory_space<vmem>>, vector<1x128xf32>
    %22 = arith.mulf %6, %20 : vector<1x128xf32>
    %23 = arith.subf %21, %22 : vector<1x128xf32>
    %24 = vector.broadcast %20 : vector<1x128xf32> to vector<16x128xf32>
    %25 = arith.mulf %2, %24 : vector<16x128xf32>
    %26 = vector.broadcast %23 : vector<1x128xf32> to vector<16x128xf32>
    %27 = arith.addf %25, %26 : vector<16x128xf32>
    %cst_13 = arith.constant 0.000000e+00 : f32
    %28 = vector.broadcast %cst_13 : f32 to vector<16x128xf32>
    %29 = arith.maximumf %27, %28 : vector<16x128xf32>
    %c0_14 = arith.constant 0 : index
    %c0_15 = arith.constant 0 : index
    %30 = vector.load %arg4[%c0_14, %c0_15] : memref<128x128xf32, #tpu.memory_space<vmem>>, vector<128x128xf32>
    %cst_16 = arith.constant dense<0.000000e+00> : vector<16x128xf32>
    %31 = tpu.matmul %29, %30, %cst_16 {dimension_numbers = #tpu.dot_dimension_numbers<[1], [0], [0], [1], [0, 0, 1, 1], [], []>} : vector<16x128xf32>, vector<128x128xf32>, vector<16x128xf32> -> vector<16x128xf32>
    %cst_17 = arith.constant dense<0.000000e+00> : vector<128xf32>
    %32 = vector.multi_reduction <add>, %31, %cst_17 [0] : vector<16x128xf32> to vector<128xf32>
    %33 = vector.shape_cast %32 : vector<128xf32> to vector<1x128xf32>
    %cst_18 = arith.constant 6.250000e-02 : f32
    %34 = vector.broadcast %cst_18 : f32 to vector<1x128xf32>
    %35 = arith.mulf %33, %34 : vector<1x128xf32>
    %36 = arith.mulf %31, %31 : vector<16x128xf32>
    %cst_19 = arith.constant dense<0.000000e+00> : vector<128xf32>
    %37 = vector.multi_reduction <add>, %36, %cst_19 [0] : vector<16x128xf32> to vector<128xf32>
    %38 = vector.shape_cast %37 : vector<128xf32> to vector<1x128xf32>
    %cst_20 = arith.constant 6.250000e-02 : f32
    %39 = vector.broadcast %cst_20 : f32 to vector<1x128xf32>
    %40 = arith.mulf %38, %39 : vector<1x128xf32>
    %41 = arith.mulf %35, %35 : vector<1x128xf32>
    %42 = arith.subf %40, %41 : vector<1x128xf32>
    %cst_21 = arith.constant 0.000000e+00 : f32
    %43 = vector.broadcast %cst_21 : f32 to vector<1x128xf32>
    %44 = arith.maximumf %42, %43 : vector<1x128xf32>
    %c0_22 = arith.constant 0 : index
    %c0_23 = arith.constant 0 : index
    %45 = vector.load %arg5[%c0_22, %c0_23] : memref<1x128xf32, #tpu.memory_space<vmem>>, vector<1x128xf32>
    %cst_24 = arith.constant 9.99999974E-6 : f32
    %46 = vector.broadcast %cst_24 : f32 to vector<1x128xf32>
    %47 = arith.addf %44, %46 : vector<1x128xf32>
    %48 = math.rsqrt %47 : vector<1x128xf32>
    %49 = arith.mulf %45, %48 : vector<1x128xf32>
    %c0_25 = arith.constant 0 : index
    %c0_26 = arith.constant 0 : index
    %50 = vector.load %arg6[%c0_25, %c0_26] : memref<1x128xf32, #tpu.memory_space<vmem>>, vector<1x128xf32>
    %51 = arith.mulf %35, %49 : vector<1x128xf32>
    %52 = arith.subf %50, %51 : vector<1x128xf32>
    %53 = vector.broadcast %49 : vector<1x128xf32> to vector<16x128xf32>
    %54 = arith.mulf %31, %53 : vector<16x128xf32>
    %55 = vector.broadcast %52 : vector<1x128xf32> to vector<16x128xf32>
    %56 = arith.addf %54, %55 : vector<16x128xf32>
    %cst_27 = arith.constant 0.000000e+00 : f32
    %57 = vector.broadcast %cst_27 : f32 to vector<16x128xf32>
    %58 = arith.maximumf %56, %57 : vector<16x128xf32>
    %c0_28 = arith.constant 0 : index
    %c0_29 = arith.constant 0 : index
    %59 = vector.load %arg7[%c0_28, %c0_29] : memref<128x128xf32, #tpu.memory_space<vmem>>, vector<128x128xf32>
    %cst_30 = arith.constant dense<0.000000e+00> : vector<16x128xf32>
    %60 = tpu.matmul %58, %59, %cst_30 {dimension_numbers = #tpu.dot_dimension_numbers<[1], [0], [0], [1], [0, 0, 1, 1], [], []>} : vector<16x128xf32>, vector<128x128xf32>, vector<16x128xf32> -> vector<16x128xf32>
    %c0_31 = arith.constant 0 : index
    %c0_32 = arith.constant 0 : index
    %61 = vector.load %arg8[%c0_31, %c0_32] : memref<1x128xf32, #tpu.memory_space<vmem>>, vector<1x128xf32>
    %62 = vector.broadcast %61 : vector<1x128xf32> to vector<16x128xf32>
    %63 = arith.addf %60, %62 : vector<16x128xf32>
    %c0_33 = arith.constant 0 : index
    %c0_34 = arith.constant 0 : index
    %64 = vector.load %arg9[%c0_33, %c0_34] : memref<16x128xf32, #tpu.memory_space<vmem>>, vector<16x128xf32>
    tpu.vector_store %arg9[%c0_33, %c0_34], %63 {strides = array<i32>} : memref<16x128xf32, #tpu.memory_space<vmem>>, vector<16x128xf32>,
    return
  }
}

</mosaic_0001>

<bundles_post_ra>
// kernel: tpu_custom_call.1
= control target key start
LH: loop header
LB: loop body
LE: loop exit
PB: predicated region body
PF: predicated region fallthrough
CT: control target
= control target key end

     0   :  { %14 = vsyncpa [#allocation3], 0  ;;  %s622_s0 = inlined_call_operand.hbm [shape: f32[16,128], index: 0, kind: input, shape index: {}]   ;;  %s623_s1 = inlined_call_operand.hbm [shape: f32[128,128], index: 1, kind: input, shape index: {}]   ;;  %s624_s2 = inlined_call_operand.vmem [shape: f32[1,128], index: 2, kind: input, shape index: {}]   ;;  %s625_s3 = inlined_call_operand.vmem [shape: f32[1,128], index: 3, kind: input, shape index: {}]   ;;  %s626_s4 = inlined_call_operand.hbm [shape: f32[128,128], index: 4, kind: input, shape index: {}]   ;;  %s627_s5 = inlined_call_operand.vmem [shape: f32[1,128], index: 5, kind: input, shape index: {}]   ;;  %s628_s6 = inlined_call_operand.vmem [shape: f32[1,128], index: 6, kind: input, shape index: {}]   ;;  %s629_s7 = inlined_call_operand.hbm [shape: f32[128,128], index: 7, kind: input, shape index: {}]   ;;  %s630_s8 = inlined_call_operand.vmem [shape: f32[1,128], index: 8, kind: input, shape index: {}]   ;;  %s631_s9 = inlined_call_operand.hbm [shape: f32[16,128], index: 9, kind: output, shape index: {}]  }
   0x1   :  { %15 = vsyncpa [#allocation6], 0 }
   0x2   :  { %16 = vsyncpa [#allocation9], 0 }
   0x3   :  { %17 = vsyncpa [#allocation4], 0  ;;  %s35_s11 = sshll.u32 %s623_s1, 4  ;;  %s496_s12 = smov [#allocation5]   ;;  %s36_s11 = int_to_ptr.hbm [resolvable:$true] %s35_s11 }
   0x4   :  { %s37_s13 = sshll.u32 %s496_s12, 4  ;;  %s22_s16 = sshll.u32 %s622_s0, 4  ;;  %s38_s13 = int_to_ptr.vmem [resolvable:$true] %s37_s13  ;;  %s23_s16 = int_to_ptr.hbm [resolvable:$true] %s22_s16 }
   0x5   :  { %s497_s17 = smov 128   ;;  %s498_s18 = smov 8  }
   0x6   :  { %43 = dma.hbm_to_vmem [thread:$0]  %s36_s11, 2048, %s38_s13, [#allocation6], %s497_s17, %s497_s17, %s498_s18  }
   0x7   :  { %s499_s19 = smov [#allocation2]   ;;  %s52_s1 = sshll.u32 %s626_s4, 4  ;;  %s53_s1 = int_to_ptr.hbm [resolvable:$true] %s52_s1 }
   0x8   :  { %s24_s20 = sshll.u32 %s499_s19, 4  ;;  %s69_s24 = sshll.u32 %s629_s7, 4  ;;  %s25_s20 = int_to_ptr.vmem [resolvable:$true] %s24_s20  ;;  %s70_s24 = int_to_ptr.hbm [resolvable:$true] %s69_s24 }
   0x9   :  { %30 = dma.hbm_to_vmem [thread:$0]  %s23_s16, 256, %s25_s20, [#allocation3], %s497_s17, %s497_s17, %s498_s18  }
   0xa   :  { %s500_s25 = smov [#allocation7]   ;;  %s501_s27 = smov [#allocation8]  }
   0xb   :  { %s54_s26 = sshll.u32 %s500_s25, 4  ;;  %s71_s4 = sshll.u32 %s501_s27, 4  ;;  %s55_s26 = int_to_ptr.vmem [resolvable:$true] %s54_s26  ;;  %s72_s4 = int_to_ptr.vmem [resolvable:$true] %s71_s4 }
   0xc   :  { %60 = dma.hbm_to_vmem [thread:$0]  %s53_s1, 2048, %s55_s26, [#allocation6], %s497_s17, %s497_s17, %s498_s18  }
   0xd   :  { %77 = dma.hbm_to_vmem [thread:$0]  %s70_s24, 2048, %s72_s4, [#allocation9], %s497_s17, %s497_s17, %s498_s18  }
   0xe   :  { %488 = dma.done.wait [#allocation3], 256  }
   0xf   :  { %489 = vsyncadd [#allocation3], 4294967040 }
  0x10   :  { %490 = dma.done.wait [#allocation6], 4096  }
  0x11   :  { %491 = vsyncadd [#allocation6], 4294963200 }
  0x12   :  { %492 = dma.done.wait [#allocation9], 2048  }
  0x13   :  { %493 = vsyncadd [#allocation9], 4294965248  ;;  %v113_v0 = vld [vmem:[#allocation5 + $0x78] sm:$0xff]  ;;  %v112_v1 = vld [vmem:[#allocation5 + $0x70] sm:$0xff]  ;;  %s325_s16 = sshll.u32 %s631_s9, 4  ;;  %s326_s16 = int_to_ptr.hbm [resolvable:$true] %s325_s16 }
  0x14   :  { %340 = vmatpush.msra.mxu3 %v113_v0  ;;  %114 = vmatpush.msra.mxu0 %v113_v0  ;;  %v111_v2 = vld [vmem:[#allocation5 + $0x68] sm:$0xff]  ;;  %v110_v3 = vld [vmem:[#allocation5 + $0x60] sm:$0xff]  ;;  %v109_v4 = vld [vmem:[#allocation5 + $0x58] sm:$0xff] }
  0x15   :  { %v108_v5 = vld [vmem:[#allocation5 + $0x50] sm:$0xff]  ;;  %v107_v6 = vld [vmem:[#allocation5 + $0x48] sm:$0xff]  ;;  %v106_v7 = vld [vmem:[#allocation5 + $0x40] sm:$0xff] }
  0x16   :  { %341 = vmatpush.msra.mxu3 %v112_v1  ;;  %115 = vmatpush.msra.mxu0 %v112_v1  ;;  %v105_v8 = vld [vmem:[#allocation5 + $0x38] sm:$0xff]  ;;  %v104_v9 = vld [vmem:[#allocation5 + $0x30] sm:$0xff]  ;;  %v103_v10 = vld [vmem:[#allocation5 + $0x28] sm:$0xff] }
  0x17   :  { %v102_v11 = vld [vmem:[#allocation5 + $0x20] sm:$0xff]  ;;  %v101_v12 = vld [vmem:[#allocation5 + $0x18] sm:$0xff]  ;;  %v100_v13 = vld [vmem:[#allocation5 + $0x10] sm:$0xff] }
  0x18   :  { %342 = vmatpush.msra.mxu3 %v111_v2  ;;  %116 = vmatpush.msra.mxu0 %v111_v2  ;;  %v99_v14 = vld [vmem:[#allocation5 + $0x8] sm:$0xff]  ;;  %v98_v15 = vld [vmem:[#allocation5] sm:$0xff]  ;;  %v97_v16 = vld [vmem:[#allocation2 + $0x8] sm:$0xff] }
  0x19   :  { %v96_v17 = vld [vmem:[#allocation2] sm:$0xff]  ;;  %v201_v18 = vld [vmem:[#allocation7 + $0x78] sm:$0xff]  ;;  %v199_v20 = vld [vmem:[#allocation7 + $0x68] sm:$0xff] }
  0x1a   :  { %343 = vmatpush.msra.mxu3 %v110_v3  ;;  %117 = vmatpush.msra.mxu0 %v110_v3  ;;  %v200_v19 = vld [vmem:[#allocation7 + $0x70] sm:$0xff]  ;;  %v198_v22 = vld [vmem:[#allocation7 + $0x60] sm:$0xff]  ;;  %v197_v24 = vld [vmem:[#allocation7 + $0x58] sm:$0xff] }
  0x1b   :  { %202 = vmatpush.msra.mxu1 %v201_v18  ;;  %v196_v28 = vld [vmem:[#allocation7 + $0x50] sm:$0xff]  ;;  %v195_v31 = vld [vmem:[#allocation7 + $0x48] sm:$0xff]  ;;  %v194_v34 = vld [vmem:[#allocation7 + $0x40] sm:$0xff] }
  0x1c   :  { %344 = vmatpush.msra.mxu3 %v109_v4  ;;  %118 = vmatpush.msra.mxu0 %v109_v4  ;;  %v193_v37 = vld [vmem:[#allocation7 + $0x38] sm:$0xff]  ;;  %v192_v40 = vld [vmem:[#allocation7 + $0x30] sm:$0xff]  ;;  %v191_v43 = vld [vmem:[#allocation7 + $0x28] sm:$0xff] }
  0x1d   :  { %203 = vmatpush.msra.mxu1 %v200_v19  ;;  %v190_v46 = vld [vmem:[#allocation7 + $0x20] sm:$0xff]  ;;  %v189_v49 = vld [vmem:[#allocation7 + $0x18] sm:$0xff]  ;;  %v188_v50 = vld [vmem:[#allocation7 + $0x10] sm:$0xff] }
  0x1e   :  { %345 = vmatpush.msra.mxu3 %v108_v5  ;;  %119 = vmatpush.msra.mxu0 %v108_v5  ;;  %v187_v53 = vld [vmem:[#allocation7 + $0x8] sm:$0xff]  ;;  %v186_v55 = vld [vmem:[#allocation7] sm:$0xff]  ;;  %v158_v63 = vld [vmem:[%s624_s2] sm:$0x1] }
  0x1f   :  { %204 = vmatpush.msra.mxu1 %v199_v20  ;;  %v171_v3 = vld [vmem:[%s625_s3] sm:$0x1]  ;;  %v286_v18 = vld [vmem:[#allocation8 + $0x60] sm:$0xff]  ;;  %v285_v19 = vld [vmem:[#allocation8 + $0x58] sm:$0xff] }
  0x20   :  { %346 = vmatpush.msra.mxu3 %v107_v6  ;;  %120 = vmatpush.msra.mxu0 %v107_v6 }
  0x21   :  { %205 = vmatpush.msra.mxu1 %v198_v22 }
  0x22   :  { %347 = vmatpush.msra.mxu3 %v106_v7  ;;  %121 = vmatpush.msra.mxu0 %v106_v7 }
  0x23   :  { %206 = vmatpush.msra.mxu1 %v197_v24  ;;  %v284_v24 = vld [vmem:[#allocation8 + $0x50] sm:$0xff] }
  0x24   :  { %348 = vmatpush.msra.mxu3 %v105_v8  ;;  %122 = vmatpush.msra.mxu0 %v105_v8 }
  0x25   :  { %207 = vmatpush.msra.mxu1 %v196_v28 }
  0x26   :  { %349 = vmatpush.msra.mxu3 %v104_v9  ;;  %123 = vmatpush.msra.mxu0 %v104_v9 }
  0x27   :  { %208 = vmatpush.msra.mxu1 %v195_v31 }
  0x28   :  { %350 = vmatpush.msra.mxu3 %v103_v10  ;;  %124 = vmatpush.msra.mxu0 %v103_v10 }
  0x29   :  { %209 = vmatpush.msra.mxu1 %v194_v34 }
  0x2a   :  { %351 = vmatpush.msra.mxu3 %v102_v11  ;;  %125 = vmatpush.msra.mxu0 %v102_v11 }
  0x2b   :  { %210 = vmatpush.msra.mxu1 %v193_v37 }
  0x2c   :  { %352 = vmatpush.msra.mxu3 %v101_v12  ;;  %126 = vmatpush.msra.mxu0 %v101_v12 }
  0x2d   :  { %211 = vmatpush.msra.mxu1 %v192_v40 }
  0x2e   :  { %353 = vmatpush.msra.mxu3 %v100_v13  ;;  %127 = vmatpush.msra.mxu0 %v100_v13 }
  0x2f   :  { %212 = vmatpush.msra.mxu1 %v191_v43 }
  0x30   :  { %354 = vmatpush.msra.mxu3 %v99_v14  ;;  %128 = vmatpush.msra.mxu0 %v99_v14  ;;  %v289_v14 = vld [vmem:[#allocation8 + $0x78] sm:$0xff] }
  0x31   :  { %213 = vmatpush.msra.mxu1 %v190_v46  ;;  %294 = vmatpush.msra.mxu2 %v289_v14  ;;  %v276_v46 = vld [vmem:[#allocation8 + $0x10] sm:$0xff] }
  0x32   :  { %355 = vmatpush.msra.mxu3 %v98_v15  ;;  %129 = vmatpush.msra.mxu0 %v98_v15 }
  0x33   :  { %133 = vmatmul.f32.vlgmr.msra.gmra.mxu3 %v97_v16  ;;  %130 = vmatmul.f32.vlgmr.msra.gmra.mxu0 %v96_v17  ;;  %v288_v16 = vld [vmem:[#allocation8 + $0x70] sm:$0xff]  ;;  %v287_v17 = vld [vmem:[#allocation8 + $0x68] sm:$0xff] }
  0x34   :  { %214 = vmatpush.msra.mxu1 %v189_v49  ;;  %295 = vmatpush.msra.mxu2 %v288_v16  ;;  %v275_v49 = vld [vmem:[#allocation8 + $0x8] sm:$0xff] }
  0x36   :  { %215 = vmatpush.msra.mxu1 %v188_v50  ;;  %296 = vmatpush.msra.mxu2 %v287_v17 }
  0x38   :  { %216 = vmatpush.msra.mxu1 %v187_v53  ;;  %297 = vmatpush.msra.mxu2 %v286_v18 }
  0x3a   :  { %217 = vmatpush.msra.mxu1 %v186_v55  ;;  %298 = vmatpush.msra.mxu2 %v285_v19 }
  0x3c   :  { %299 = vmatpush.msra.mxu2 %v284_v24 }
  0xb0   :  { %v577_v21 = vpop.f32.mrf.mxu0 }
  0xb1   :  { %v145_v23 = vmul.f32 %v577_v21, %v577_v21 }
  0xb6   :  { %v581_v25 = vpop.f32.mrf.mxu3 }
  0xb7   :  { %v137_v26 = vadd.f32 %v581_v25, %v577_v21  ;;  %v146_v27 = vmul.f32 %v581_v25, %v581_v25 }
  0xb9   :  { %v138_v29 = vrot.slane %v137_v26, 4  ;;  %v147_v30 = vadd.f32 %v146_v27, %v145_v23  ;;  %v283_v27 = vld [vmem:[#allocation8 + $0x48] sm:$0xff] }
  0xba   :  { %300 = vmatpush.msra.mxu2 %v283_v27 }
  0xbb   :  { %v139_v32 = vadd.f32 %v138_v29, %v137_v26  ;;  %v148_v33 = vrot.slane %v147_v30, 4 }
  0xbd   :  { %v140_v35 = vrot.slane %v139_v32, 2  ;;  %v149_v36 = vadd.f32 %v148_v33, %v147_v30  ;;  %v282_v30 = vld [vmem:[#allocation8 + $0x40] sm:$0xff]  ;;  %v281_v33 = vld [vmem:[#allocation8 + $0x38] sm:$0xff] }
  0xbe   :  { %301 = vmatpush.msra.mxu2 %v282_v30 }
  0xbf   :  { %v141_v38 = vadd.f32 %v140_v35, %v139_v32  ;;  %v150_v39 = vrot.slane %v149_v36, 2 }
  0xc0   :  { %302 = vmatpush.msra.mxu2 %v281_v33 }
  0xc1   :  { %v142_v41 = vrot.slane %v141_v38, 1  ;;  %v151_v42 = vadd.f32 %v150_v39, %v149_v36  ;;  %v280_v36 = vld [vmem:[#allocation8 + $0x30] sm:$0xff]  ;;  %v279_v39 = vld [vmem:[#allocation8 + $0x28] sm:$0xff] }
  0xc2   :  { %303 = vmatpush.msra.mxu2 %v280_v36 }
  0xc3   :  { %v143_v44 = vadd.f32 %v142_v41, %v141_v38  ;;  %v152_v45 = vrot.slane %v151_v42, 1 }
  0xc4   :  { %304 = vmatpush.msra.mxu2 %v279_v39 }
  0xc5   :  { %v144_v47 = vmul.f32 0.0625, %v143_v44  ;;  %v153_v48 = vadd.f32 %v152_v45, %v151_v42  ;;  %v278_v42 = vld [vmem:[#allocation8 + $0x20] sm:$0xff]  ;;  %v277_v45 = vld [vmem:[#allocation8 + $0x18] sm:$0xff] }
  0xc6   :  { %305 = vmatpush.msra.mxu2 %v278_v42 }
  0xc7   :  { %v154_v51 = vmul.f32 0.0625, %v153_v48  ;;  %v155_v52 = vmul.f32 %v144_v47, %v144_v47 }
  0xc8   :  { %306 = vmatpush.msra.mxu2 %v277_v45 }
  0xc9   :  { %v156_v54 = vsub.f32 %v154_v51, %v155_v52  ;;  %v274_v51 = vld [vmem:[#allocation8] sm:$0xff] }
  0xca   :  { %307 = vmatpush.msra.mxu2 %v276_v46 }
  0xcb   :  { %v157_v56 = vmax.f32 %v156_v54, 0.0 }
  0xcc   :  { %308 = vmatpush.msra.mxu2 %v275_v49 }
  0xcd   :  { %v159_v57 = vadd.f32 1e-05, %v157_v56 }
  0xce   :  { %309 = vmatpush.msra.mxu2 %v274_v51 }
  0xcf   :  { %364 = vrsqrt.f32 %v159_v57  ;;  %vm166_vm1 = vweird.f32 %v159_v57 }
  0xd5   :  { %v365_v58 = vpop.eup %364 }
  0xd6   :  { %v161_v59 = vmul.f32 %v365_v58, %v159_v57  ;;  %vm167_vm0 = vweird.f32 %v365_v58 }
  0xd7   :  { %vm168_vm2 = vmor %vm166_vm1, %vm167_vm0 }
  0xd8   :  { %v162_v60 = vmul.f32 %v365_v58, %v161_v59  ;;  %v246_v59 = vld [vmem:[%s627_s5] sm:$0x1] }
  0xda   :  { %v163_v61 = vmul.f32 0.5, %v162_v60 }
  0xdc   :  { %v164_v62 = vsub.f32 1.5, %v163_v61 }
  0xde   :  { %v165_v0 = vmul.f32 %v365_v58, %v164_v62 }
  0xe0   :  { %v169_v1 = vsel %vm168_vm2, %v365_v58, %v165_v0 }
  0xe1   :  { %v170_v2 = vmul.f32 %v169_v1, %v158_v63  ;;  %v259_v63 = vld [vmem:[%s628_s6] sm:$0x1]  ;;  %s502_s6 = smov [#allocation10]  }
  0xe2   :  { %s323_s13 = sshll.u32 %s502_s6, 4  ;;  %s324_s13 = int_to_ptr.vmem [resolvable:$true] %s323_s13 }
  0xe3   :  { %v175_v4 = vperm.slane %v170_v2, 0  ;;  %v172_v5 = vmul.f32 %v170_v2, %v144_v47 }
  0xe5   :  { %v173_v6 = vsub.f32 %v171_v3, %v172_v5  ;;  %v177_v7 = vmul.f32 %v175_v4, %v577_v21  ;;  %v178_v11 = vmul.f32 %v175_v4, %v581_v25 }
  0xe7   :  { %v180_v8 = vperm.slane %v173_v6, 0 }
  0xe9   :  { %v182_v9 = vadd.f32 %v180_v8, %v177_v7  ;;  %v183_v12 = vadd.f32 %v180_v8, %v178_v11 }
  0xeb   :  { %v184_v10 = vmax.f32 %v182_v9, 0.0  ;;  %v185_v13 = vmax.f32 %v183_v12, 0.0 }
  0xed   :  { %218 = vmatmul.f32.vlgmr.msra.gmra.mxu1 %v184_v10  ;;  %v363_v10 = vld [vmem:[%s630_s8] ss:$0 sm:$0xff] }
  0xf5   :  { %221 = vmatmul.f32.gmra.mxu1 %v185_v13 }
 0x16a   :  { %v595_v15 = vpop.f32.mrf.mxu1 }
 0x16b   :  { %v233_v21 = vmul.f32 %v595_v15, %v595_v15 }
 0x172   :  { %v597_v20 = vpop.f32.mrf.mxu1 }
 0x173   :  { %v225_v22 = vadd.f32 %v597_v20, %v595_v15  ;;  %v234_v23 = vmul.f32 %v597_v20, %v597_v20 }
 0x175   :  { %v226_v25 = vrot.slane %v225_v22, 4  ;;  %v235_v26 = vadd.f32 %v234_v23, %v233_v21 }
 0x177   :  { %v227_v28 = vadd.f32 %v226_v25, %v225_v22  ;;  %v236_v29 = vrot.slane %v235_v26, 4 }
 0x179   :  { %v228_v31 = vrot.slane %v227_v28, 2  ;;  %v237_v32 = vadd.f32 %v236_v29, %v235_v26 }
 0x17b   :  { %v229_v34 = vadd.f32 %v228_v31, %v227_v28  ;;  %v238_v35 = vrot.slane %v237_v32, 2 }
 0x17d   :  { %v230_v37 = vrot.slane %v229_v34, 1  ;;  %v239_v38 = vadd.f32 %v238_v35, %v237_v32 }
 0x17f   :  { %v231_v40 = vadd.f32 %v230_v37, %v229_v34  ;;  %v240_v41 = vrot.slane %v239_v38, 1 }
 0x181   :  { %v232_v43 = vmul.f32 0.0625, %v231_v40  ;;  %v241_v44 = vadd.f32 %v240_v41, %v239_v38 }
 0x183   :  { %v242_v47 = vmul.f32 0.0625, %v241_v44  ;;  %v243_v48 = vmul.f32 %v232_v43, %v232_v43 }
 0x185   :  { %v244_v50 = vsub.f32 %v242_v47, %v243_v48 }
 0x187   :  { %v245_v52 = vmax.f32 %v244_v50, 0.0 }
 0x189   :  { %v247_v53 = vadd.f32 1e-05, %v245_v52 }
 0x18b   :  { %366 = vrsqrt.f32 %v247_v53  ;;  %vm254_vm4 = vweird.f32 %v247_v53 }
 0x191   :  { %v367_v54 = vpop.eup %366 }
 0x192   :  { %v249_v55 = vmul.f32 %v367_v54, %v247_v53  ;;  %vm255_vm3 = vweird.f32 %v367_v54 }
 0x193   :  { %vm256_vm5 = vmor %vm254_vm4, %vm255_vm3 }
 0x194   :  { %v250_v56 = vmul.f32 %v367_v54, %v249_v55 }
 0x196   :  { %v251_v57 = vmul.f32 0.5, %v250_v56 }
 0x198   :  { %v252_v58 = vsub.f32 1.5, %v251_v57 }
 0x19a   :  { %v253_v60 = vmul.f32 %v367_v54, %v252_v58 }
 0x19c   :  { %v257_v61 = vsel %vm256_vm5, %v367_v54, %v253_v60 }
 0x19d   :  { %v258_v62 = vmul.f32 %v257_v61, %v246_v59 }
 0x19f   :  { %v263_v0 = vperm.slane %v258_v62, 0  ;;  %v260_v1 = vmul.f32 %v258_v62, %v232_v43 }
 0x1a1   :  { %v261_v2 = vsub.f32 %v259_v63, %v260_v1  ;;  %v265_v3 = vmul.f32 %v263_v0, %v595_v15  ;;  %v266_v7 = vmul.f32 %v263_v0, %v597_v20 }
 0x1a3   :  { %v268_v4 = vperm.slane %v261_v2, 0 }
 0x1a5   :  { %v270_v5 = vadd.f32 %v268_v4, %v265_v3  ;;  %v271_v8 = vadd.f32 %v268_v4, %v266_v7 }
 0x1a7   :  { %v272_v6 = vmax.f32 %v270_v5, 0.0  ;;  %v273_v9 = vmax.f32 %v271_v8, 0.0 }
 0x1a9   :  { %310 = vmatmul.f32.vlgmr.msra.gmra.mxu2 %v272_v6 }
 0x1b1   :  { %313 = vmatmul.f32.gmra.mxu2 %v273_v9 }
 0x22c   :  { %v311_v11 = vpop.f32.mrf.mxu2 }
 0x22d   :  { %v312_v12 = vadd.f32 %v363_v10, %v311_v11 }
 0x22f   :  { %317 = vst [vmem:[#allocation10] sm:$0xff] %v312_v12 }
 0x234   :  { %v314_v13 = vpop.f32.mrf.mxu2 }
 0x235   :  { %v315_v14 = vadd.f32 %v363_v10, %v314_v13 }
 0x237   :  { %318 = vst [vmem:[#allocation10 + $0x8] sm:$0xff] %v315_v14 }
 0x238   :  { %331 = dma.vmem_to_hbm [thread:$0]  %s324_s13, 256, %s326_s16, [#allocation4], %s497_s17, %s497_s17, %s498_s18  }
 0x239   :  { %494 = dma.done.wait [#allocation4], 256  }
 0x23a   :  { %495 = vsyncadd [#allocation4], 4294967040 }
 0x23b   :  { %336 = vsyncpa [#allocation3], 1 }
 0x23c   :  { %337 = vsyncpa [#allocation6], 1 }
 0x23d   :  { %338 = vsyncpa [#allocation9], 1 }
 0x23e   :  { %339 = vsyncpa [#allocation4], 1 }

</bundles_post_ra>
